<compile_context>
chip_gen: v7x
topology: tpu7x:2x2x1
jax: 0.10.0
libtpu: 0.0.40
codegen_flags: <defaults>
</compile_context>

<pallas_src>
import jax
import jax.numpy as jnp
from jax import lax
from jax.experimental import pallas as pl
from jax.experimental.pallas import tpu as pltpu

VOCAB = 32000   # nn.Embedding(32000, 768)
MAX_POS = 64    # nn.Embedding(64, 768)
D = 768         # hidden size


def _round_up(x, m):
    return -(-x // m) * m


def _make_kernel(BB, T_pad, d, n_inner):
    rows = BB * T_pad  # rows gathered per grid step (multiple of 8)

    def issue_gather(ids_ref, tok_hbm, tok_buf, sem, tile_idx, slot):
        """Issue `rows` row-gather DMAs for batch-tile `tile_idx` into `slot`."""
        base = tile_idx * rows

        def body(r, carry):
            tok_id = ids_ref[base + r]
            pltpu.make_async_copy(tok_hbm.at[tok_id],
                                  tok_buf.at[slot, r],
                                  sem.at[slot]).start()
            return carry

        # rows is always a multiple of 8 (T_pad % 8 == 0), so unroll=8 divides.
        lax.fori_loop(0, rows, body, 0, unroll=8)

    def kernel(ids_ref, tok_hbm, pos_ref, out_ref, tok_buf, sem):
        # ids_ref : SMEM (B_pad*T_pad,) int32  (scalar prefetch)
        # tok_hbm : (VOCAB, d) token table ref left in HBM (pl.ANY)
        # pos_ref : (T_pad, d) positional rows, resident in VMEM
        # out_ref : (BB, T_pad, d) output block in VMEM
        # tok_buf : (2, rows, d) double-buffered VMEM gather scratch
        # sem     : (2,) DMA semaphores, one per buffer slot
        o = pl.program_id(0)           # outer ("parallel") tile index
        j = pl.program_id(1)           # inner ("arbitrary") tile index
        g = o * n_inner + j            # global batch-tile index
        slot = j % 2

        # Prime the pipeline: gather for the first inner step of this core.
        @pl.when(j == 0)
        def _():
            issue_gather(ids_ref, tok_hbm, tok_buf, sem, g, slot)

        # Prefetch the NEXT inner step's gather into the other slot so its
        # latency is hidden behind this step's wait/compute/writeback.
        @pl.when(j + 1 < n_inner)
        def _():
            issue_gather(ids_ref, tok_hbm, tok_buf, sem, g + 1, 1 - slot)

        # One aggregate wait retiring all `rows` row copies of the current
        # slot (DMA-sem increments are byte-proportional; this descriptor
        # covers exactly rows*d elements).
        pltpu.make_async_copy(tok_hbm.at[pl.ds(0, rows)],
                              tok_buf.at[slot],
                              sem.at[slot]).wait()

        # Positional add in the tables' native dtype (bf16-native on v6e/v7x).
        pos = pos_ref[...]                                   # (T_pad, d)
        tok = tok_buf[slot].reshape(BB, T_pad, d)            # (BB, T_pad, d)
        out_ref[...] = (tok + pos[None, :, :]).astype(out_ref.dtype)

    return kernel


def text_encoder_forward(ids, emb_table, pos_table, *, batch_block=32):
    """ids: (B, T) int token ids.  Returns (B, T, D) embeddings."""
    B, T = ids.shape
    V, d = emb_table.shape
    P, d2 = pos_table.shape
    assert d == d2, (d, d2)
    if T > P:
        raise ValueError(f"sequence length {T} exceeds positional table {P}")

    T_pad = _round_up(T, 8)             # sublane-aligned sequence tile
    assert T_pad <= P, (T_pad, P)       # holds since P = 64 is a multiple of 8

    # Batch tile: large for DMA efficiency, but keep >= 2 tiles when B >= 2 so
    # the outer "parallel" grid axis can shard across both TCs on v7x.
    BB = max(1, min(batch_block, _round_up(B, 2) // 2))
    n_tiles = -(-B // BB)
    n_outer = 2 if n_tiles >= 2 else 1
    n_tiles = _round_up(n_tiles, n_outer)
    n_inner = n_tiles // n_outer
    B_pad = n_tiles * BB
    rows = BB * T_pad
    assert rows <= V, (rows, V)         # aggregate-wait source slice stays in range

    # Clamp ids (keeps every gather DMA in-bounds) and pad to the tiled shape.
    ids = jnp.clip(ids.astype(jnp.int32), 0, V - 1)
    ids_padded = jnp.zeros((B_pad, T_pad), jnp.int32).at[:B, :T].set(ids)
    flat_ids = ids_padded.reshape(B_pad * T_pad)

    itemsize = jnp.dtype(emb_table.dtype).itemsize
    vmem_bytes = (2 * rows * d * itemsize        # double-buffered gather scratch
                  + 2 * rows * d * itemsize      # double-buffered output blocks
                  + 2 * T_pad * d * itemsize     # positional block
                  + (4 << 20))                   # headroom
    vmem_bytes = int(min(vmem_bytes, 100 << 20))

    kernel = _make_kernel(BB, T_pad, d, n_inner)

    out = pl.pallas_call(
        kernel,
        out_shape=jax.ShapeDtypeStruct((B_pad, T_pad, d), emb_table.dtype),
        grid_spec=pltpu.PrefetchScalarGridSpec(
            num_scalar_prefetch=1,
            grid=(n_outer, n_inner),
            in_specs=[
                # Token table: stays in HBM, gathered manually row-by-row.
                pl.BlockSpec(memory_space=pl.ANY),
                # Positional rows actually used: constant block index ->
                # DMA'd into VMEM once and reused by every grid step.
                pl.BlockSpec((T_pad, d), lambda o, j, ids_sm: (0, 0)),
            ],
            out_specs=pl.BlockSpec(
                (BB, T_pad, d),
                lambda o, j, ids_sm: (o * n_inner + j, 0, 0)),
            scratch_shapes=[
                pltpu.VMEM((2, rows, d), emb_table.dtype),
                pltpu.SemaphoreType.DMA((2,)),
            ],
        ),
        compiler_params=pltpu.CompilerParams(
            dimension_semantics=("parallel", "arbitrary"),
            vmem_limit_bytes=vmem_bytes),
    )(flat_ids, emb_table, pos_table)

    return out[:B, :T, :]


def _reference(ids, emb_table, pos_table):
    T = ids.shape[1]
    return (jnp.take(emb_table, ids, axis=0)
            + jnp.take(pos_table, jnp.arange(T), axis=0)[None, :, :])


if __name__ == "__main__":
    key = jax.random.PRNGKey(0)
    k_ids1, k_ids2, k_emb, k_pos = jax.random.split(key, 4)

    # Deterministic synthetic parameters (nn.Embedding default init ~ N(0, 1)).
    emb_table = jax.random.normal(k_emb, (VOCAB, D), dtype=jnp.float32)
    pos_table = jax.random.normal(k_pos, (MAX_POS, D), dtype=jnp.float32)

    # Case 1: small batch, aligned sequence length (default tiling).
    B1, T1 = 2, 8
    ids1 = jax.random.randint(k_ids1, (B1, T1), 0, VOCAB, dtype=jnp.int32)
    out1 = jax.block_until_ready(text_encoder_forward(ids1, emb_table, pos_table))
    ref1 = _reference(ids1, emb_table, pos_table)
    assert out1.shape == (B1, T1, D), out1.shape
    assert jnp.allclose(out1, ref1, atol=1e-6), "mismatch vs reference (case 1)"

    # Case 2: odd sequence length + multi-step inner grid (exercises padding
    # and the cross-step double-buffered prefetch path).
    B2, T2 = 4, 11
    ids2 = jax.random.randint(k_ids2, (B2, T2), 0, VOCAB, dtype=jnp.int32)
    out2 = jax.block_until_ready(
        text_encoder_forward(ids2, emb_table, pos_table, batch_block=1))
    ref2 = _reference(ids2, emb_table, pos_table)
    assert out2.shape == (B2, T2, D), out2.shape
    assert jnp.allclose(out2, ref2, atol=1e-6), "mismatch vs reference (case 2)"

    print("KERNEL_OK")
</pallas_src>

<mosaic_0001>
module attributes {stable_mosaic.version = 11 : i64} {
  func.func @kernel(%arg0: i32, %arg1: i32, %arg2: memref<16xi32, #tpu.memory_space<smem>>, %arg3: memref<32000x768xf32, #tpu.memory_space<any>>, %arg4: memref<8x768xf32, #tpu.memory_space<vmem>>, %arg5: memref<1x8x768xf32, #tpu.memory_space<vmem>>, %arg6: memref<2x8x768xf32, #tpu.memory_space<vmem>>, %arg7: memref<2x!tpu.dma_semaphore, #tpu.memory_space<semaphore_mem>>) attributes {dimension_semantics = [#tpu.dimension_semantics<parallel>, #tpu.dimension_semantics<arbitrary>], iteration_bounds = array<i64: 2, 1>, scalar_prefetch = 1 : i64, scratch_operands = 2 : i64, tpu.core_type = #tpu.core_type<tc>, window_params = [{}, {transform_indices = @transform_1, window_bounds = array<i64: 8, 768>}, {transform_indices = @transform_2, window_bounds = array<i64: 1, 8, 768>}]} {
    %c1_i32 = arith.constant 1 : i32
    %0 = arith.muli %arg0, %c1_i32 : i32
    %1 = arith.addi %0, %arg1 : i32
    %c2_i32 = arith.constant 2 : i32
    %c0_i32 = arith.constant 0 : i32
    %2 = arith.cmpi eq, %c2_i32, %c0_i32 : i32
    %c1_i32_0 = arith.constant 1 : i32
    %3 = arith.select %2, %c1_i32_0, %c2_i32 : i32
    %4 = arith.remsi %arg1, %3 : i32
    %c0_i32_1 = arith.constant 0 : i32
    %5 = arith.cmpi ne, %4, %c0_i32_1 : i32
    %c0_i32_2 = arith.constant 0 : i32
    %6 = arith.cmpi slt, %4, %c0_i32_2 : i32
    %c0_i32_3 = arith.constant 0 : i32
    %7 = arith.cmpi slt, %3, %c0_i32_3 : i32
    %8 = arith.xori %6, %7 : i1
    %9 = arith.andi %8, %5 : i1
    %10 = arith.addi %4, %3 : i32
    %11 = arith.select %9, %10, %4 : i32
    %c0_i32_4 = arith.constant 0 : i32
    %12 = arith.cmpi eq, %arg1, %c0_i32_4 : i32
    %13 = arith.extui %12 : i1 to i32
    %c0_i32_5 = arith.constant 0 : i32
    %14 = arith.cmpi ne, %13, %c0_i32_5 : i32
    scf.if %14 {
      %c8_i32 = arith.constant 8 : i32
      %32 = arith.muli %1, %c8_i32 : i32
      %c0_i32_19 = arith.constant 0 : i32
      %33 = arith.addi %32, %c0_i32_19 : i32
      %34 = arith.index_cast %33 : i32 to index
      %35 = memref.load %arg2[%34] : memref<16xi32, #tpu.memory_space<smem>>
      %c0_i32_20 = arith.constant 0 : i32
      %36 = tpu.memref_slice %arg3[%35, %c0_i32_20] : memref<32000x768xf32, #tpu.memory_space<any>> -> memref<1x768xf32, #tpu.memory_space<any>>
      %37 = tpu.memref_squeeze %36 : memref<1x768xf32, #tpu.memory_space<any>> -> memref<768xf32, #tpu.memory_space<any>>
      %c0_i32_21 = arith.constant 0 : i32
      %38 = tpu.memref_slice %arg6[%11, %c0_i32_19, %c0_i32_21] : memref<2x8x768xf32, #tpu.memory_space<vmem>> -> memref<1x1x768xf32, #tpu.memory_space<vmem>>
      %39 = tpu.memref_squeeze %38 : memref<1x1x768xf32, #tpu.memory_space<vmem>> -> memref<768xf32, #tpu.memory_space<vmem>>
      %40 = tpu.memref_slice %arg7[%11] : memref<2x!tpu.dma_semaphore, #tpu.memory_space<semaphore_mem>> -> memref<1x!tpu.dma_semaphore, #tpu.memory_space<semaphore_mem>>
      %41 = tpu.memref_squeeze %40 : memref<1x!tpu.dma_semaphore, #tpu.memory_space<semaphore_mem>> -> memref<!tpu.dma_semaphore, #tpu.memory_space<semaphore_mem>>
      tpu.enqueue_dma source(%37 : memref<768xf32, #tpu.memory_space<any>>) target(%39 : memref<768xf32, #tpu.memory_space<vmem>>) target_semaphore(%41 : memref<!tpu.dma_semaphore, #tpu.memory_space<semaphore_mem>>)
      %c1_i32_22 = arith.constant 1 : i32
      %42 = arith.addi %32, %c1_i32_22 : i32
      %43 = arith.index_cast %42 : i32 to index
      %44 = memref.load %arg2[%43] : memref<16xi32, #tpu.memory_space<smem>>
      %c0_i32_23 = arith.constant 0 : i32
      %45 = tpu.memref_slice %arg3[%44, %c0_i32_23] : memref<32000x768xf32, #tpu.memory_space<any>> -> memref<1x768xf32, #tpu.memory_space<any>>
      %46 = tpu.memref_squeeze %45 : memref<1x768xf32, #tpu.memory_space<any>> -> memref<768xf32, #tpu.memory_space<any>>
      %c0_i32_24 = arith.constant 0 : i32
      %47 = tpu.memref_slice %arg6[%11, %c1_i32_22, %c0_i32_24] : memref<2x8x768xf32, #tpu.memory_space<vmem>> -> memref<1x1x768xf32, #tpu.memory_space<vmem>>
      %48 = tpu.memref_squeeze %47 : memref<1x1x768xf32, #tpu.memory_space<vmem>> -> memref<768xf32, #tpu.memory_space<vmem>>
      %49 = tpu.memref_slice %arg7[%11] : memref<2x!tpu.dma_semaphore, #tpu.memory_space<semaphore_mem>> -> memref<1x!tpu.dma_semaphore, #tpu.memory_space<semaphore_mem>>
      %50 = tpu.memref_squeeze %49 : memref<1x!tpu.dma_semaphore, #tpu.memory_space<semaphore_mem>> -> memref<!tpu.dma_semaphore, #tpu.memory_space<semaphore_mem>>
      tpu.enqueue_dma source(%46 : memref<768xf32, #tpu.memory_space<any>>) target(%48 : memref<768xf32, #tpu.memory_space<vmem>>) target_semaphore(%50 : memref<!tpu.dma_semaphore, #tpu.memory_space<semaphore_mem>>)
      %c2_i32_25 = arith.constant 2 : i32
      %51 = arith.addi %32, %c2_i32_25 : i32
      %52 = arith.index_cast %51 : i32 to index
      %53 = memref.load %arg2[%52] : memref<16xi32, #tpu.memory_space<smem>>
      %c0_i32_26 = arith.constant 0 : i32
      %54 = tpu.memref_slice %arg3[%53, %c0_i32_26] : memref<32000x768xf32, #tpu.memory_space<any>> -> memref<1x768xf32, #tpu.memory_space<any>>
      %55 = tpu.memref_squeeze %54 : memref<1x768xf32, #tpu.memory_space<any>> -> memref<768xf32, #tpu.memory_space<any>>
      %c0_i32_27 = arith.constant 0 : i32
      %56 = tpu.memref_slice %arg6[%11, %c2_i32_25, %c0_i32_27] : memref<2x8x768xf32, #tpu.memory_space<vmem>> -> memref<1x1x768xf32, #tpu.memory_space<vmem>>
      %57 = tpu.memref_squeeze %56 : memref<1x1x768xf32, #tpu.memory_space<vmem>> -> memref<768xf32, #tpu.memory_space<vmem>>
      %58 = tpu.memref_slice %arg7[%11] : memref<2x!tpu.dma_semaphore, #tpu.memory_space<semaphore_mem>> -> memref<1x!tpu.dma_semaphore, #tpu.memory_space<semaphore_mem>>
      %59 = tpu.memref_squeeze %58 : memref<1x!tpu.dma_semaphore, #tpu.memory_space<semaphore_mem>> -> memref<!tpu.dma_semaphore, #tpu.memory_space<semaphore_mem>>
      tpu.enqueue_dma source(%55 : memref<768xf32, #tpu.memory_space<any>>) target(%57 : memref<768xf32, #tpu.memory_space<vmem>>) target_semaphore(%59 : memref<!tpu.dma_semaphore, #tpu.memory_space<semaphore_mem>>)
      %c3_i32 = arith.constant 3 : i32
      %60 = arith.addi %32, %c3_i32 : i32
      %61 = arith.index_cast %60 : i32 to index
      %62 = memref.load %arg2[%61] : memref<16xi32, #tpu.memory_space<smem>>
      %c0_i32_28 = arith.constant 0 : i32
      %63 = tpu.memref_slice %arg3[%62, %c0_i32_28] : memref<32000x768xf32, #tpu.memory_space<any>> -> memref<1x768xf32, #tpu.memory_space<any>>
      %64 = tpu.memref_squeeze %63 : memref<1x768xf32, #tpu.memory_space<any>> -> memref<768xf32, #tpu.memory_space<any>>
      %c0_i32_29 = arith.constant 0 : i32
      %65 = tpu.memref_slice %arg6[%11, %c3_i32, %c0_i32_29] : memref<2x8x768xf32, #tpu.memory_space<vmem>> -> memref<1x1x768xf32, #tpu.memory_space<vmem>>
      %66 = tpu.memref_squeeze %65 : memref<1x1x768xf32, #tpu.memory_space<vmem>> -> memref<768xf32, #tpu.memory_space<vmem>>
      %67 = tpu.memref_slice %arg7[%11] : memref<2x!tpu.dma_semaphore, #tpu.memory_space<semaphore_mem>> -> memref<1x!tpu.dma_semaphore, #tpu.memory_space<semaphore_mem>>
      %68 = tpu.memref_squeeze %67 : memref<1x!tpu.dma_semaphore, #tpu.memory_space<semaphore_mem>> -> memref<!tpu.dma_semaphore, #tpu.memory_space<semaphore_mem>>
      tpu.enqueue_dma source(%64 : memref<768xf32, #tpu.memory_space<any>>) target(%66 : memref<768xf32, #tpu.memory_space<vmem>>) target_semaphore(%68 : memref<!tpu.dma_semaphore, #tpu.memory_space<semaphore_mem>>)
      %c4_i32 = arith.constant 4 : i32
      %69 = arith.addi %32, %c4_i32 : i32
      %70 = arith.index_cast %69 : i32 to index
      %71 = memref.load %arg2[%70] : memref<16xi32, #tpu.memory_space<smem>>
      %c0_i32_30 = arith.constant 0 : i32
      %72 = tpu.memref_slice %arg3[%71, %c0_i32_30] : memref<32000x768xf32, #tpu.memory_space<any>> -> memref<1x768xf32, #tpu.memory_space<any>>
      %73 = tpu.memref_squeeze %72 : memref<1x768xf32, #tpu.memory_space<any>> -> memref<768xf32, #tpu.memory_space<any>>
      %c0_i32_31 = arith.constant 0 : i32
      %74 = tpu.memref_slice %arg6[%11, %c4_i32, %c0_i32_31] : memref<2x8x768xf32, #tpu.memory_space<vmem>> -> memref<1x1x768xf32, #tpu.memory_space<vmem>>
      %75 = tpu.memref_squeeze %74 : memref<1x1x768xf32, #tpu.memory_space<vmem>> -> memref<768xf32, #tpu.memory_space<vmem>>
      %76 = tpu.memref_slice %arg7[%11] : memref<2x!tpu.dma_semaphore, #tpu.memory_space<semaphore_mem>> -> memref<1x!tpu.dma_semaphore, #tpu.memory_space<semaphore_mem>>
      %77 = tpu.memref_squeeze %76 : memref<1x!tpu.dma_semaphore, #tpu.memory_space<semaphore_mem>> -> memref<!tpu.dma_semaphore, #tpu.memory_space<semaphore_mem>>
      tpu.enqueue_dma source(%73 : memref<768xf32, #tpu.memory_space<any>>) target(%75 : memref<768xf32, #tpu.memory_space<vmem>>) target_semaphore(%77 : memref<!tpu.dma_semaphore, #tpu.memory_space<semaphore_mem>>)
      %c5_i32 = arith.constant 5 : i32
      %78 = arith.addi %32, %c5_i32 : i32
      %79 = arith.index_cast %78 : i32 to index
      %80 = memref.load %arg2[%79] : memref<16xi32, #tpu.memory_space<smem>>
      %c0_i32_32 = arith.constant 0 : i32
      %81 = tpu.memref_slice %arg3[%80, %c0_i32_32] : memref<32000x768xf32, #tpu.memory_space<any>> -> memref<1x768xf32, #tpu.memory_space<any>>
      %82 = tpu.memref_squeeze %81 : memref<1x768xf32, #tpu.memory_space<any>> -> memref<768xf32, #tpu.memory_space<any>>
      %c0_i32_33 = arith.constant 0 : i32
      %83 = tpu.memref_slice %arg6[%11, %c5_i32, %c0_i32_33] : memref<2x8x768xf32, #tpu.memory_space<vmem>> -> memref<1x1x768xf32, #tpu.memory_space<vmem>>
      %84 = tpu.memref_squeeze %83 : memref<1x1x768xf32, #tpu.memory_space<vmem>> -> memref<768xf32, #tpu.memory_space<vmem>>
      %85 = tpu.memref_slice %arg7[%11] : memref<2x!tpu.dma_semaphore, #tpu.memory_space<semaphore_mem>> -> memref<1x!tpu.dma_semaphore, #tpu.memory_space<semaphore_mem>>
      %86 = tpu.memref_squeeze %85 : memref<1x!tpu.dma_semaphore, #tpu.memory_space<semaphore_mem>> -> memref<!tpu.dma_semaphore, #tpu.memory_space<semaphore_mem>>
      tpu.enqueue_dma source(%82 : memref<768xf32, #tpu.memory_space<any>>) target(%84 : memref<768xf32, #tpu.memory_space<vmem>>) target_semaphore(%86 : memref<!tpu.dma_semaphore, #tpu.memory_space<semaphore_mem>>)
      %c6_i32 = arith.constant 6 : i32
      %87 = arith.addi %32, %c6_i32 : i32
      %88 = arith.index_cast %87 : i32 to index
      %89 = memref.load %arg2[%88] : memref<16xi32, #tpu.memory_space<smem>>
      %c0_i32_34 = arith.constant 0 : i32
      %90 = tpu.memref_slice %arg3[%89, %c0_i32_34] : memref<32000x768xf32, #tpu.memory_space<any>> -> memref<1x768xf32, #tpu.memory_space<any>>
      %91 = tpu.memref_squeeze %90 : memref<1x768xf32, #tpu.memory_space<any>> -> memref<768xf32, #tpu.memory_space<any>>
      %c0_i32_35 = arith.constant 0 : i32
      %92 = tpu.memref_slice %arg6[%11, %c6_i32, %c0_i32_35] : memref<2x8x768xf32, #tpu.memory_space<vmem>> -> memref<1x1x768xf32, #tpu.memory_space<vmem>>
      %93 = tpu.memref_squeeze %92 : memref<1x1x768xf32, #tpu.memory_space<vmem>> -> memref<768xf32, #tpu.memory_space<vmem>>
      %94 = tpu.memref_slice %arg7[%11] : memref<2x!tpu.dma_semaphore, #tpu.memory_space<semaphore_mem>> -> memref<1x!tpu.dma_semaphore, #tpu.memory_space<semaphore_mem>>
      %95 = tpu.memref_squeeze %94 : memref<1x!tpu.dma_semaphore, #tpu.memory_space<semaphore_mem>> -> memref<!tpu.dma_semaphore, #tpu.memory_space<semaphore_mem>>
      tpu.enqueue_dma source(%91 : memref<768xf32, #tpu.memory_space<any>>) target(%93 : memref<768xf32, #tpu.memory_space<vmem>>) target_semaphore(%95 : memref<!tpu.dma_semaphore, #tpu.memory_space<semaphore_mem>>)
      %c7_i32 = arith.constant 7 : i32
      %96 = arith.addi %32, %c7_i32 : i32
      %97 = arith.index_cast %96 : i32 to index
      %98 = memref.load %arg2[%97] : memref<16xi32, #tpu.memory_space<smem>>
      %c0_i32_36 = arith.constant 0 : i32
      %99 = tpu.memref_slice %arg3[%98, %c0_i32_36] : memref<32000x768xf32, #tpu.memory_space<any>> -> memref<1x768xf32, #tpu.memory_space<any>>
      %100 = tpu.memref_squeeze %99 : memref<1x768xf32, #tpu.memory_space<any>> -> memref<768xf32, #tpu.memory_space<any>>
      %c0_i32_37 = arith.constant 0 : i32
      %101 = tpu.memref_slice %arg6[%11, %c7_i32, %c0_i32_37] : memref<2x8x768xf32, #tpu.memory_space<vmem>> -> memref<1x1x768xf32, #tpu.memory_space<vmem>>
      %102 = tpu.memref_squeeze %101 : memref<1x1x768xf32, #tpu.memory_space<vmem>> -> memref<768xf32, #tpu.memory_space<vmem>>
      %103 = tpu.memref_slice %arg7[%11] : memref<2x!tpu.dma_semaphore, #tpu.memory_space<semaphore_mem>> -> memref<1x!tpu.dma_semaphore, #tpu.memory_space<semaphore_mem>>
      %104 = tpu.memref_squeeze %103 : memref<1x!tpu.dma_semaphore, #tpu.memory_space<semaphore_mem>> -> memref<!tpu.dma_semaphore, #tpu.memory_space<semaphore_mem>>
      tpu.enqueue_dma source(%100 : memref<768xf32, #tpu.memory_space<any>>) target(%102 : memref<768xf32, #tpu.memory_space<vmem>>) target_semaphore(%104 : memref<!tpu.dma_semaphore, #tpu.memory_space<semaphore_mem>>)
      %c8_i32_38 = arith.constant 8 : i32
    } else {
    }
    %c1_i32_6 = arith.constant 1 : i32
    %15 = arith.addi %arg1, %c1_i32_6 : i32
    %c1_i32_7 = arith.constant 1 : i32
    %16 = arith.cmpi slt, %15, %c1_i32_7 : i32
    %17 = arith.extui %16 : i1 to i32
    %c0_i32_8 = arith.constant 0 : i32
    %18 = arith.cmpi ne, %17, %c0_i32_8 : i32
    scf.if %18 {
      %c1_i32_19 = arith.constant 1 : i32
      %32 = arith.addi %1, %c1_i32_19 : i32
      %c1_i32_20 = arith.constant 1 : i32
      %33 = arith.subi %c1_i32_20, %11 : i32
      %c8_i32 = arith.constant 8 : i32
      %34 = arith.muli %32, %c8_i32 : i32
      %c0_i32_21 = arith.constant 0 : i32
      %35 = arith.addi %34, %c0_i32_21 : i32
      %36 = arith.index_cast %35 : i32 to index
      %37 = memref.load %arg2[%36] : memref<16xi32, #tpu.memory_space<smem>>
      %c0_i32_22 = arith.constant 0 : i32
      %38 = tpu.memref_slice %arg3[%37, %c0_i32_22] : memref<32000x768xf32, #tpu.memory_space<any>> -> memref<1x768xf32, #tpu.memory_space<any>>
      %39 = tpu.memref_squeeze %38 : memref<1x768xf32, #tpu.memory_space<any>> -> memref<768xf32, #tpu.memory_space<any>>
      %c0_i32_23 = arith.constant 0 : i32
      %40 = tpu.memref_slice %arg6[%33, %c0_i32_21, %c0_i32_23] : memref<2x8x768xf32, #tpu.memory_space<vmem>> -> memref<1x1x768xf32, #tpu.memory_space<vmem>>
      %41 = tpu.memref_squeeze %40 : memref<1x1x768xf32, #tpu.memory_space<vmem>> -> memref<768xf32, #tpu.memory_space<vmem>>
      %42 = tpu.memref_slice %arg7[%33] : memref<2x!tpu.dma_semaphore, #tpu.memory_space<semaphore_mem>> -> memref<1x!tpu.dma_semaphore, #tpu.memory_space<semaphore_mem>>
      %43 = tpu.memref_squeeze %42 : memref<1x!tpu.dma_semaphore, #tpu.memory_space<semaphore_mem>> -> memref<!tpu.dma_semaphore, #tpu.memory_space<semaphore_mem>>
      tpu.enqueue_dma source(%39 : memref<768xf32, #tpu.memory_space<any>>) target(%41 : memref<768xf32, #tpu.memory_space<vmem>>) target_semaphore(%43 : memref<!tpu.dma_semaphore, #tpu.memory_space<semaphore_mem>>)
      %c1_i32_24 = arith.constant 1 : i32
      %44 = arith.addi %34, %c1_i32_24 : i32
      %45 = arith.index_cast %44 : i32 to index
      %46 = memref.load %arg2[%45] : memref<16xi32, #tpu.memory_space<smem>>
      %c0_i32_25 = arith.constant 0 : i32
      %47 = tpu.memref_slice %arg3[%46, %c0_i32_25] : memref<32000x768xf32, #tpu.memory_space<any>> -> memref<1x768xf32, #tpu.memory_space<any>>
      %48 = tpu.memref_squeeze %47 : memref<1x768xf32, #tpu.memory_space<any>> -> memref<768xf32, #tpu.memory_space<any>>
      %c0_i32_26 = arith.constant 0 : i32
      %49 = tpu.memref_slice %arg6[%33, %c1_i32_24, %c0_i32_26] : memref<2x8x768xf32, #tpu.memory_space<vmem>> -> memref<1x1x768xf32, #tpu.memory_space<vmem>>
      %50 = tpu.memref_squeeze %49 : memref<1x1x768xf32, #tpu.memory_space<vmem>> -> memref<768xf32, #tpu.memory_space<vmem>>
      %51 = tpu.memref_slice %arg7[%33] : memref<2x!tpu.dma_semaphore, #tpu.memory_space<semaphore_mem>> -> memref<1x!tpu.dma_semaphore, #tpu.memory_space<semaphore_mem>>
      %52 = tpu.memref_squeeze %51 : memref<1x!tpu.dma_semaphore, #tpu.memory_space<semaphore_mem>> -> memref<!tpu.dma_semaphore, #tpu.memory_space<semaphore_mem>>
      tpu.enqueue_dma source(%48 : memref<768xf32, #tpu.memory_space<any>>) target(%50 : memref<768xf32, #tpu.memory_space<vmem>>) target_semaphore(%52 : memref<!tpu.dma_semaphore, #tpu.memory_space<semaphore_mem>>)
      %c2_i32_27 = arith.constant 2 : i32
      %53 = arith.addi %34, %c2_i32_27 : i32
      %54 = arith.index_cast %53 : i32 to index
      %55 = memref.load %arg2[%54] : memref<16xi32, #tpu.memory_space<smem>>
      %c0_i32_28 = arith.constant 0 : i32
      %56 = tpu.memref_slice %arg3[%55, %c0_i32_28] : memref<32000x768xf32, #tpu.memory_space<any>> -> memref<1x768xf32, #tpu.memory_space<any>>
      %57 = tpu.memref_squeeze %56 : memref<1x768xf32, #tpu.memory_space<any>> -> memref<768xf32, #tpu.memory_space<any>>
      %c0_i32_29 = arith.constant 0 : i32
      %58 = tpu.memref_slice %arg6[%33, %c2_i32_27, %c0_i32_29] : memref<2x8x768xf32, #tpu.memory_space<vmem>> -> memref<1x1x768xf32, #tpu.memory_space<vmem>>
      %59 = tpu.memref_squeeze %58 : memref<1x1x768xf32, #tpu.memory_space<vmem>> -> memref<768xf32, #tpu.memory_space<vmem>>
      %60 = tpu.memref_slice %arg7[%33] : memref<2x!tpu.dma_semaphore, #tpu.memory_space<semaphore_mem>> -> memref<1x!tpu.dma_semaphore, #tpu.memory_space<semaphore_mem>>
      %61 = tpu.memref_squeeze %60 : memref<1x!tpu.dma_semaphore, #tpu.memory_space<semaphore_mem>> -> memref<!tpu.dma_semaphore, #tpu.memory_space<semaphore_mem>>
      tpu.enqueue_dma source(%57 : memref<768xf32, #tpu.memory_space<any>>) target(%59 : memref<768xf32, #tpu.memory_space<vmem>>) target_semaphore(%61 : memref<!tpu.dma_semaphore, #tpu.memory_space<semaphore_mem>>)
      %c3_i32 = arith.constant 3 : i32
      %62 = arith.addi %34, %c3_i32 : i32
      %63 = arith.index_cast %62 : i32 to index
      %64 = memref.load %arg2[%63] : memref<16xi32, #tpu.memory_space<smem>>
      %c0_i32_30 = arith.constant 0 : i32
      %65 = tpu.memref_slice %arg3[%64, %c0_i32_30] : memref<32000x768xf32, #tpu.memory_space<any>> -> memref<1x768xf32, #tpu.memory_space<any>>
      %66 = tpu.memref_squeeze %65 : memref<1x768xf32, #tpu.memory_space<any>> -> memref<768xf32, #tpu.memory_space<any>>
      %c0_i32_31 = arith.constant 0 : i32
      %67 = tpu.memref_slice %arg6[%33, %c3_i32, %c0_i32_31] : memref<2x8x768xf32, #tpu.memory_space<vmem>> -> memref<1x1x768xf32, #tpu.memory_space<vmem>>
      %68 = tpu.memref_squeeze %67 : memref<1x1x768xf32, #tpu.memory_space<vmem>> -> memref<768xf32, #tpu.memory_space<vmem>>
      %69 = tpu.memref_slice %arg7[%33] : memref<2x!tpu.dma_semaphore, #tpu.memory_space<semaphore_mem>> -> memref<1x!tpu.dma_semaphore, #tpu.memory_space<semaphore_mem>>
      %70 = tpu.memref_squeeze %69 : memref<1x!tpu.dma_semaphore, #tpu.memory_space<semaphore_mem>> -> memref<!tpu.dma_semaphore, #tpu.memory_space<semaphore_mem>>
      tpu.enqueue_dma source(%66 : memref<768xf32, #tpu.memory_space<any>>) target(%68 : memref<768xf32, #tpu.memory_space<vmem>>) target_semaphore(%70 : memref<!tpu.dma_semaphore, #tpu.memory_space<semaphore_mem>>)
      %c4_i32 = arith.constant 4 : i32
      %71 = arith.addi %34, %c4_i32 : i32
      %72 = arith.index_cast %71 : i32 to index
      %73 = memref.load %arg2[%72] : memref<16xi32, #tpu.memory_space<smem>>
      %c0_i32_32 = arith.constant 0 : i32
      %74 = tpu.memref_slice %arg3[%73, %c0_i32_32] : memref<32000x768xf32, #tpu.memory_space<any>> -> memref<1x768xf32, #tpu.memory_space<any>>
      %75 = tpu.memref_squeeze %74 : memref<1x768xf32, #tpu.memory_space<any>> -> memref<768xf32, #tpu.memory_space<any>>
      %c0_i32_33 = arith.constant 0 : i32
      %76 = tpu.memref_slice %arg6[%33, %c4_i32, %c0_i32_33] : memref<2x8x768xf32, #tpu.memory_space<vmem>> -> memref<1x1x768xf32, #tpu.memory_space<vmem>>
      %77 = tpu.memref_squeeze %76 : memref<1x1x768xf32, #tpu.memory_space<vmem>> -> memref<768xf32, #tpu.memory_space<vmem>>
      %78 = tpu.memref_slice %arg7[%33] : memref<2x!tpu.dma_semaphore, #tpu.memory_space<semaphore_mem>> -> memref<1x!tpu.dma_semaphore, #tpu.memory_space<semaphore_mem>>
      %79 = tpu.memref_squeeze %78 : memref<1x!tpu.dma_semaphore, #tpu.memory_space<semaphore_mem>> -> memref<!tpu.dma_semaphore, #tpu.memory_space<semaphore_mem>>
      tpu.enqueue_dma source(%75 : memref<768xf32, #tpu.memory_space<any>>) target(%77 : memref<768xf32, #tpu.memory_space<vmem>>) target_semaphore(%79 : memref<!tpu.dma_semaphore, #tpu.memory_space<semaphore_mem>>)
      %c5_i32 = arith.constant 5 : i32
      %80 = arith.addi %34, %c5_i32 : i32
      %81 = arith.index_cast %80 : i32 to index
      %82 = memref.load %arg2[%81] : memref<16xi32, #tpu.memory_space<smem>>
      %c0_i32_34 = arith.constant 0 : i32
      %83 = tpu.memref_slice %arg3[%82, %c0_i32_34] : memref<32000x768xf32, #tpu.memory_space<any>> -> memref<1x768xf32, #tpu.memory_space<any>>
      %84 = tpu.memref_squeeze %83 : memref<1x768xf32, #tpu.memory_space<any>> -> memref<768xf32, #tpu.memory_space<any>>
      %c0_i32_35 = arith.constant 0 : i32
      %85 = tpu.memref_slice %arg6[%33, %c5_i32, %c0_i32_35] : memref<2x8x768xf32, #tpu.memory_space<vmem>> -> memref<1x1x768xf32, #tpu.memory_space<vmem>>
      %86 = tpu.memref_squeeze %85 : memref<1x1x768xf32, #tpu.memory_space<vmem>> -> memref<768xf32, #tpu.memory_space<vmem>>
      %87 = tpu.memref_slice %arg7[%33] : memref<2x!tpu.dma_semaphore, #tpu.memory_space<semaphore_mem>> -> memref<1x!tpu.dma_semaphore, #tpu.memory_space<semaphore_mem>>
      %88 = tpu.memref_squeeze %87 : memref<1x!tpu.dma_semaphore, #tpu.memory_space<semaphore_mem>> -> memref<!tpu.dma_semaphore, #tpu.memory_space<semaphore_mem>>
      tpu.enqueue_dma source(%84 : memref<768xf32, #tpu.memory_space<any>>) target(%86 : memref<768xf32, #tpu.memory_space<vmem>>) target_semaphore(%88 : memref<!tpu.dma_semaphore, #tpu.memory_space<semaphore_mem>>)
      %c6_i32 = arith.constant 6 : i32
      %89 = arith.addi %34, %c6_i32 : i32
      %90 = arith.index_cast %89 : i32 to index
      %91 = memref.load %arg2[%90] : memref<16xi32, #tpu.memory_space<smem>>
      %c0_i32_36 = arith.constant 0 : i32
      %92 = tpu.memref_slice %arg3[%91, %c0_i32_36] : memref<32000x768xf32, #tpu.memory_space<any>> -> memref<1x768xf32, #tpu.memory_space<any>>
      %93 = tpu.memref_squeeze %92 : memref<1x768xf32, #tpu.memory_space<any>> -> memref<768xf32, #tpu.memory_space<any>>
      %c0_i32_37 = arith.constant 0 : i32
      %94 = tpu.memref_slice %arg6[%33, %c6_i32, %c0_i32_37] : memref<2x8x768xf32, #tpu.memory_space<vmem>> -> memref<1x1x768xf32, #tpu.memory_space<vmem>>
      %95 = tpu.memref_squeeze %94 : memref<1x1x768xf32, #tpu.memory_space<vmem>> -> memref<768xf32, #tpu.memory_space<vmem>>
      %96 = tpu.memref_slice %arg7[%33] : memref<2x!tpu.dma_semaphore, #tpu.memory_space<semaphore_mem>> -> memref<1x!tpu.dma_semaphore, #tpu.memory_space<semaphore_mem>>
      %97 = tpu.memref_squeeze %96 : memref<1x!tpu.dma_semaphore, #tpu.memory_space<semaphore_mem>> -> memref<!tpu.dma_semaphore, #tpu.memory_space<semaphore_mem>>
      tpu.enqueue_dma source(%93 : memref<768xf32, #tpu.memory_space<any>>) target(%95 : memref<768xf32, #tpu.memory_space<vmem>>) target_semaphore(%97 : memref<!tpu.dma_semaphore, #tpu.memory_space<semaphore_mem>>)
      %c7_i32 = arith.constant 7 : i32
      %98 = arith.addi %34, %c7_i32 : i32
      %99 = arith.index_cast %98 : i32 to index
      %100 = memref.load %arg2[%99] : memref<16xi32, #tpu.memory_space<smem>>
      %c0_i32_38 = arith.constant 0 : i32
      %101 = tpu.memref_slice %arg3[%100, %c0_i32_38] : memref<32000x768xf32, #tpu.memory_space<any>> -> memref<1x768xf32, #tpu.memory_space<any>>
      %102 = tpu.memref_squeeze %101 : memref<1x768xf32, #tpu.memory_space<any>> -> memref<768xf32, #tpu.memory_space<any>>
      %c0_i32_39 = arith.constant 0 : i32
      %103 = tpu.memref_slice %arg6[%33, %c7_i32, %c0_i32_39] : memref<2x8x768xf32, #tpu.memory_space<vmem>> -> memref<1x1x768xf32, #tpu.memory_space<vmem>>
      %104 = tpu.memref_squeeze %103 : memref<1x1x768xf32, #tpu.memory_space<vmem>> -> memref<768xf32, #tpu.memory_space<vmem>>
      %105 = tpu.memref_slice %arg7[%33] : memref<2x!tpu.dma_semaphore, #tpu.memory_space<semaphore_mem>> -> memref<1x!tpu.dma_semaphore, #tpu.memory_space<semaphore_mem>>
      %106 = tpu.memref_squeeze %105 : memref<1x!tpu.dma_semaphore, #tpu.memory_space<semaphore_mem>> -> memref<!tpu.dma_semaphore, #tpu.memory_space<semaphore_mem>>
      tpu.enqueue_dma source(%102 : memref<768xf32, #tpu.memory_space<any>>) target(%104 : memref<768xf32, #tpu.memory_space<vmem>>) target_semaphore(%106 : memref<!tpu.dma_semaphore, #tpu.memory_space<semaphore_mem>>)
      %c8_i32_40 = arith.constant 8 : i32
    } else {
    }
    %c0_i32_9 = arith.constant 0 : i32
    %c0_i32_10 = arith.constant 0 : i32
    %19 = tpu.memref_slice %arg3[%c0_i32_9, %c0_i32_10] : memref<32000x768xf32, #tpu.memory_space<any>> -> memref<8x768xf32, #tpu.memory_space<any>>
    %c0_i32_11 = arith.constant 0 : i32
    %c0_i32_12 = arith.constant 0 : i32
    %20 = tpu.memref_slice %arg6[%11, %c0_i32_11, %c0_i32_12] : memref<2x8x768xf32, #tpu.memory_space<vmem>> -> memref<1x8x768xf32, #tpu.memory_space<vmem>>
    %21 = tpu.memref_squeeze %20 : memref<1x8x768xf32, #tpu.memory_space<vmem>> -> memref<8x768xf32, #tpu.memory_space<vmem>>
    %22 = tpu.memref_slice %arg7[%11] : memref<2x!tpu.dma_semaphore, #tpu.memory_space<semaphore_mem>> -> memref<1x!tpu.dma_semaphore, #tpu.memory_space<semaphore_mem>>
    %23 = tpu.memref_squeeze %22 : memref<1x!tpu.dma_semaphore, #tpu.memory_space<semaphore_mem>> -> memref<!tpu.dma_semaphore, #tpu.memory_space<semaphore_mem>>
    tpu.wait_dma2 semaphore(%23 : memref<!tpu.dma_semaphore, #tpu.memory_space<semaphore_mem>>) src(%19 : memref<8x768xf32, #tpu.memory_space<any>>) dst(%21 : memref<8x768xf32, #tpu.memory_space<vmem>>)
    %c0 = arith.constant 0 : index
    %c0_13 = arith.constant 0 : index
    %24 = vector.load %arg4[%c0, %c0_13] : memref<8x768xf32, #tpu.memory_space<vmem>>, vector<8x768xf32>
    %25 = arith.index_cast %11 : i32 to index
    %c0_14 = arith.constant 0 : index
    %c0_15 = arith.constant 0 : index
    %26 = vector.load %arg6[%25, %c0_14, %c0_15] : memref<2x8x768xf32, #tpu.memory_space<vmem>>, vector<1x8x768xf32>
    %27 = vector.shape_cast %26 : vector<1x8x768xf32> to vector<8x768xf32>
    %28 = vector.shape_cast %27 : vector<8x768xf32> to vector<1x8x768xf32>
    %29 = vector.shape_cast %24 : vector<8x768xf32> to vector<1x8x768xf32>
    %30 = arith.addf %28, %29 : vector<1x8x768xf32>
    %c0_16 = arith.constant 0 : index
    %c0_17 = arith.constant 0 : index
    %c0_18 = arith.constant 0 : index
    %31 = vector.load %arg5[%c0_16, %c0_17, %c0_18] : memref<1x8x768xf32, #tpu.memory_space<vmem>>, vector<1x8x768xf32>
    tpu.vector_store %arg5[%c0_16, %c0_17, %c0_18], %30 {strides = array<i32>} : memref<1x8x768xf32, #tpu.memory_space<vmem>>, vector<1x8x768xf32>,
    return
  }
  func.func @transform_1(%arg0: i32, %arg1: i32, %arg2: memref<16xi32, #tpu.memory_space<smem>>) -> (i32, i32) {
    %c0_i32 = arith.constant 0 : i32
    %c0_i32_0 = arith.constant 0 : i32
    %c0_i32_1 = arith.constant 0 : i32
    return %c0_i32, %c0_i32_0 : i32, i32
  }
  func.func @transform_2(%arg0: i32, %arg1: i32, %arg2: memref<16xi32, #tpu.memory_space<smem>>) -> (i32, i32, i32) {
    %c1_i32 = arith.constant 1 : i32
    %0 = arith.muli %arg0, %c1_i32 : i32
    %1 = arith.addi %0, %arg1 : i32
    %c0_i32 = arith.constant 0 : i32
    %c0_i32_0 = arith.constant 0 : i32
    %c0_i32_1 = arith.constant 0 : i32
    return %1, %c0_i32, %c0_i32_0 : i32, i32, i32
  }
}

</mosaic_0001>

<bundles_post_ra>
// kernel: tpu_custom_call.1
= control target key start
LH: loop header
LB: loop body
LE: loop exit
PB: predicated region body
PF: predicated region fallthrough
CT: control target
= control target key end

     0   :  { %s1450_s0 = inlined_call_operand.hbm [shape: s32[16], index: 0, kind: input, shape index: {}]   ;;  %s1451_s1 = inlined_call_operand.hbm [shape: f32[32000,768], index: 1, kind: input, shape index: {}]   ;;  %s1452_s2 = inlined_call_operand.hbm [shape: f32[64,768], index: 2, kind: input, shape index: {}]   ;;  %s1453_s3 = inlined_call_operand.hbm [shape: f32[2,8,768], index: 3, kind: output, shape index: {}]  }
   0x1   :  { %1473 = sst [smem:[#allocation40_spill]] %s1452_s2  ;;  %s749_s14 = scalar_lea.hbm %s1450_s0, 16 }
   0x2   :  { %1474 = sst [smem:[#allocation41_spill]] %s1453_s3  ;;  %p750_p0 = scmp.ne.s32.totalorder %s1450_s0, %s749_s14 }
   0x3   :  { %p753_p1 = scmp.lt.u32.totalorder %s749_s14, %s1450_s0 }
   0x5   :  { %p755_p2 = pnand %p753_p1, %p750_p0 }
   0x7   :  { %758 = shalt.err (!%p755_p2)  }
   0x8   :  { %s1067_s19 = smov [#allocation5]  }
   0x9   :  { %9 = dma.hbm_to_smem %s1450_s0, 16, %s1067_s19, [#allocation4] }
   0xa   :  { %1031 = dma.done.wait [#allocation4], 16 }
   0xb   :  { %1032 = vsyncadd [#allocation4], 4294967280 }
   0xc   :  { %11 = sfence }
   0xd   :  { %12 = vsyncpa [#allocation7], 0 }
   0xe   :  { %13 = vsyncpa [#allocation8], 0 }
   0xf   :  { %15 = vsyncpa [#allocation8 + $0x1], 0  ;;  %s1105_s22 = smov 0   ;;  %s1107_s23 = smov 0  }
  0x10   :  { %s1109_s24 = smov 0   ;;  %s1111_s25 = smov 0  }
  0x11   :  { %s1113_s26 = smov 0   ;;  %s1115_s27 = smov 0  }
  0x12 LB: > { %1475 = sst [smem:[#allocation30_spill]] %s1045_s22  ;;  %s639_s0 = sadd.s32 4294967295, %s1065_s27   ;;  %s1065_s27 = sphi %s1115_s27, %s21_s27   ;;  %s1061_s26 = sphi %s1113_s26, %s1508_s26   ;;  %s1057_s25 = sphi %s1111_s25, %s1507_s25   ;;  %s1053_s24 = sphi %s1109_s24, %s1506_s24   ;;  %s1049_s23 = sphi %s1107_s23, %s1505_s23   ;;  %s1045_s22 = sphi %s1105_s22, %s1504_s22  }
  0x13   : > { %1476 = sst [smem:[#allocation31_spill]] %s1049_s23  ;;  %s640_s28 = sadd.s32 4294967294, %s1065_s27  }
  0x14   : > { %1477 = sst [smem:[#allocation32_spill]] %s1053_s24  ;;  %s33_s29 = sadd.s32 1, %s1061_s26 }
  0x15   : > { %1478 = sst [smem:[#allocation33_spill]] %s1057_s25  ;;  %s63_s30 = sadd.s32 1, %s1053_s24 }
  0x16   : > { %1479 = sst [smem:[#allocation34_spill]] %s1061_s26  ;;  %p35_p3 = scmp.ge.s32.totalorder %s33_s29, 2 }
  0x17   : > { %1480 = sst [smem:[#allocation35_spill]] %s1065_s27  ;;  %p73_p4 = scmp.ne.s32.totalorder %s1053_s24, %s1049_s23 }
  0x18   : > { %p74_p5 = scmp.eq.s32.totalorder %s639_s0, 1  ;;  %p79_p6 = scmp.ne.s32.totalorder %s1049_s23, %s1045_s22 }
  0x19   : > { %s1510_s29 = smov (%p35_p3, %s33_s29), 0  ;;  %p80_p8 = scmp.eq.s32.totalorder %s640_s28, 1 }
  0x1a   : > { %1481 = sst [smem:[#allocation36_spill]] %s1510_s29  ;;  %p1145_p7 = por %p74_p5, %p73_p4 }
  0x1b   : > { %s60_s5 = ssub.s32 %s1061_s26, %s1510_s29  ;;  %p641_p9 = scmp.ge.s32.totalorder %s1065_s27, 1 }
  0x1c   : > { %s1482_s4 = scalar_select %p1145_p7, 1, 0 }
  0x1d   : > { %p61_p10 = scmp.eq.s32.totalorder %s60_s5, 0  ;;  %p1152_p11 = por %p80_p8, %p79_p6 }
  0x1e   : > { %1483 = sst [smem:[#allocation37_spill]] %s1482_s4  ;;  %p87_p12 = scmp.lt.s32.totalorder %s1065_s27, 3 }
  0x1f   : > { %s1484_s6 = scalar_select %p1152_p11, 1, 0 }
  0x20   : > { %s1158_s7 = scalar_select %p61_p10, %s1053_s24, %s63_s30  }
  0x21   : > { %1485 = sst [smem:[#allocation38_spill]] %s1484_s6  ;;  %p1160_p13 = pnand %p641_p9, %p87_p12 }
  0x22   : > { %1486 = sst [smem:[#allocation39_spill]] %s1158_s7  ;;  %p1164_p0 = scmp.eq.s32.totalorder %s639_s0, 0 }
  0x23   : > { %s1487_s8 = scalar_select %p1160_p13, 1, 0 }
  0x24   : > { %s1488_s9 = scalar_select %p1164_p0, 1, 0 }
  0x25   : > { %p685_p1 = pneg %p1160_p13  ;;  %s1068_s10 = smov [#allocation6]  }
  0x26   : > { %s100_s11 = sshll.u32 %s1068_s10, 4  ;;  %s1490_s2 = sld [smem:[#allocation40_spill]]  ;;  %s101_s11 = int_to_ptr.vmem [resolvable:$true] %s100_s11 }
  0x27   : > { %p1172_p2 = pnand %p1164_p0, %p685_p1 }
  0x29   : > { %p761_p4 = pneg %p1172_p2 }
  0x2c   : > { %s759_s15 = scalar_lea.hbm %s1490_s2, 768  ;;  %s764_s20 = scalar_lea.hbm %s1490_s2, 6144 }
  0x2d   : > { %p760_p3 = scmp.ne.s32.totalorder %s1490_s2, %s759_s15  ;;  %p765_p8 = scmp.lt.u32.totalorder %s764_s20, %s759_s15 }
  0x2e   : > { %p766_p9 = scmp.lt.u32.totalorder %s759_s15, %s1490_s2 }
  0x2f   : > { %p762_p5 = pnand %p761_p4, %p760_p3 }
  0x30   : > { %p767_p10 = por %p766_p9, %p765_p8 }
  0x31   : > { %p763_p6 = pneg %p762_p5 }
  0x33   : > { %p768_p12 = pnand %p767_p10, %p763_p6 }
  0x35   : > { %771 = shalt.err (!%p768_p12)
}
  0x36   : > { %s772_s28 = scalar_lea.vmem %s101_s11, 768  ;;  %p780_p0 = scmp.lt.s32.totalorder %s101_s11, %s101_s11 }
  0x37   : > { %p773_p1 = scmp.ne.s32.totalorder %s101_s11, %s772_s28  ;;  %p781_p13 = scmp.lt.s32.totalorder %s772_s28, %s772_s28 }
  0x39   : > { %p775_p11 = pnand %p773_p1, %p761_p4  ;;  %p782_p3 = por %p781_p13, %p780_p0 }
  0x3b   : > { %p776_p7 = pneg %p775_p11 }
  0x3d   : > { %p783_p5 = pnand %p782_p3, %p776_p7 }
  0x3f   : > { %786 = shalt.err (!%p783_p5)
}
  0x40   : > { %688 = dma.hbm_to_vmem [thread:$0]  (!%p1172_p2), %s1490_s2, 768, %s101_s11, [#allocation7]  }
  0x41   : > { %p1491_p8 = scmp.ne.s32.totalorder %s1487_s8, 0 }
  0x42   : > { %p1492_p6 = scmp.ne.s32.totalorder (!%p1491_p8), %s1488_s9, 0 }
  0x43   : > { %113 = sbr.rel (%p1491_p8) target bundleno = 313 (0x139), region = 24 }
  0x4a   : > { %1034 = dma.done.wait (%p1492_p6), [#allocation7], 768  }
  0x4b   : > { %1036 = vsyncadd (%p1492_p6), [#allocation7], 4294966528  ;;  %s1458_s10 = sand.u32 1, %s1049_s23   ;;  %s1203_s13 = sshll.u32 %s1057_s25, 3 }
  0x4c   : > { %s1207_s11 = smul.u32 48, %s1458_s10  ;;  %s147_s8 = sld [smem:[#allocation5 + %s1203_s13]] }
  0x4d   : > { %s1461_s12 = smov [#allocation2]   ;;  %s162_s9 = sadd.s32 1, %s1203_s13 }
  0x4e   : > { %s158_s14 = sshll.u32 %s1461_s12, 4  ;;  %s496_s15 = scalar_lea.vmem %s1461_s12, 1  ;;  %s1211_s14 = int_to_ptr.vmem [resolvable:$true] %s158_s14 }
  0x4f   : > { %s1215_s16 = sld [smem:[#allocation5 + %s162_s9]]  ;;  %s173_s17 = sshll.u32 %s496_s15, 4  ;;  %s1217_s17 = int_to_ptr.vmem [resolvable:$true] %s173_s17 }
  0x50   : > { %s177_s21 = sadd.s32 2, %s1203_s13  ;;  %s1221_s0 = scalar_lea.vmem %s1461_s12, 2 }
  0x51   : > { %s1223_s30 = sld [smem:[#allocation5 + %s177_s21]]  ;;  %s188_s10 = sshll.u32 %s1221_s0, 4  ;;  %s1252_s10 = int_to_ptr.vmem [resolvable:$true] %s188_s10 }
  0x52   : > { %s148_s18 = sshrl.u32 %s147_s8, 3  ;;  %s149_s19 = sand.u32 7, %s147_s8  }
  0x53   : > { %s150_s20 = smul.u32 48, %s148_s18  ;;  %s1233_s7 = scalar_lea.hbm %s1451_s1, 3072000 }
  0x55   : > { %s151_s28 = sadd.s32 %s150_s20, %s149_s19  ;;  %s164_s15 = sshrl.u32 %s1215_s16, 3 }
  0x56   : > { %s646_s5 = sshll.u32 %s151_s28, 4 }
  0x57   : > { %s153_s29 = scalar_lea.hbm %s1451_s1, %s646_s5 }
  0x58   : > { %s787_s26 = scalar_lea.hbm %s153_s29, 96  ;;  %p790_p11 = scmp.lt.u32.totalorder %s153_s29, %s1451_s1 }
  0x59   : > { %p788_p7 = scmp.ne.s32.totalorder %s153_s29, %s787_s26  ;;  %p791_p13 = scmp.lt.u32.totalorder %s1233_s7, %s787_s26 }
  0x5a   : > { %p793_p2 = scmp.lt.u32.totalorder %s787_s26, %s153_s29 }
  0x5b   : > { %p792_p0 = por %p791_p13, %p790_p11 }
  0x5d   : > { %p794_p4 = por %p793_p2, %p792_p0 }
  0x5f   : > { %p795_p9 = pnand %p794_p4, %p788_p7 }
  0x61   : > { %798 = shalt.err (!%p795_p9)  }
  0x62   : > { %s799_s2 = scalar_lea.vmem %s1211_s14, 96  ;;  %s1242_s19 = scalar_lea.vmem %s1211_s14, 1536 }
  0x63   : > { %p800_p10 = scmp.ne.s32.totalorder %s1211_s14, %s799_s2  ;;  %p804_p12 = scmp.lt.s32.totalorder %s1211_s14, %s1211_s14 }
  0x64   : > { %p805_p1 = scmp.lt.s32.totalorder %s1242_s19, %s799_s2 }
  0x66   : > { %p806_p3 = por %p805_p1, %p804_p12 }
  0x68   : > { %p807_p5 = pnand %p806_p3, %p800_p10 }
  0x6a   : > { %810 = shalt.err (!%p807_p5)  }
  0x6b   : > { %s1070_s24 = smov 128   ;;  %s1071_s26 = smov 1  }
  0x6c   : > { %161 = dma.hbm_to_vmem [thread:$0]  %s153_s29, 96, %s1211_s14, [#allocation3], %s1070_s24, %s1070_s24, %s1071_s26 }
  0x6d   : > { %s165_s12 = sand.u32 7, %s1215_s16   ;;  %s166_s20 = smul.u32 48, %s164_s15 }
  0x6e   : > { %s192_s21 = sadd.s32 3, %s1203_s13  ;;  %s179_s28 = sshrl.u32 %s1223_s30, 3 }
  0x6f   : > { %s167_s0 = sadd.s32 %s166_s20, %s165_s12  ;;  %s180_s9 = sand.u32 7, %s1223_s30  }
  0x70   : > { %s647_s5 = sshll.u32 %s167_s0, 4  ;;  %s181_s6 = smul.u32 48, %s179_s28 }
  0x71   : > { %s169_s2 = scalar_lea.hbm %s1451_s1, %s647_s5 }
  0x72   : > { %s811_s22 = scalar_lea.hbm %s169_s2, 96  ;;  %p814_p6 = scmp.lt.u32.totalorder %s169_s2, %s1451_s1 }
  0x73   : > { %p812_p8 = scmp.ne.s32.totalorder %s169_s2, %s811_s22  ;;  %p815_p7 = scmp.lt.u32.totalorder %s1233_s7, %s811_s22 }
  0x74   : > { %p817_p13 = scmp.lt.u32.totalorder %s811_s22, %s169_s2 }
  0x75   : > { %p816_p11 = por %p815_p7, %p814_p6 }
  0x77   : > { %p818_p0 = por %p817_p13, %p816_p11 }
  0x79   : > { %p819_p2 = pnand %p818_p0, %p812_p8 }
  0x7b   : > { %822 = shalt.err (!%p819_p2)  }
  0x7c   : > { %s823_s29 = scalar_lea.vmem %s1217_s17, 96  ;;  %p828_p9 = scmp.lt.s32.totalorder %s1217_s17, %s1211_s14 }
  0x7d   : > { %p824_p4 = scmp.ne.s32.totalorder %s1217_s17, %s823_s29  ;;  %p829_p10 = scmp.lt.s32.totalorder %s1242_s19, %s823_s29 }
  0x7f   : > { %p830_p12 = por %p829_p10, %p828_p9 }
  0x81   : > { %p831_p1 = pnand %p830_p12, %p824_p4 }
  0x83   : > { %834 = shalt.err (!%p831_p1)  }
  0x84   : > { %176 = dma.hbm_to_vmem [thread:$0]  %s169_s2, 96, %s1217_s17, [#allocation3], %s1070_s24, %s1070_s24, %s1071_s26 }
  0x85   : > { %s182_s3 = sadd.s32 %s181_s6, %s180_s9  ;;  %s1273_s22 = sld [smem:[#allocation5 + %s192_s21]] }
  0x86   : > { %s648_s27 = sshll.u32 %s182_s3, 4  ;;  %s1493_s16 = smov [#allocation2]  }
  0x87   : > { %s510_s30 = scalar_lea.vmem %s1493_s16, 3  ;;  %s184_s20 = scalar_lea.hbm %s1451_s1, %s648_s27 }
  0x88   : > { %s203_s0 = sshll.u32 %s510_s30, 4  ;;  %s835_s28 = scalar_lea.hbm %s184_s20, 96  ;;  %s1292_s0 = int_to_ptr.vmem [resolvable:$true] %s203_s0 }
  0x89   : > { %p836_p3 = scmp.ne.s32.totalorder %s184_s20, %s835_s28  ;;  %p838_p5 = scmp.lt.u32.totalorder %s184_s20, %s1451_s1 }
  0x8a   : > { %p839_p8 = scmp.lt.u32.totalorder %s1233_s7, %s835_s28  ;;  %p841_p7 = scmp.lt.u32.totalorder %s835_s28, %s184_s20 }
  0x8c   : > { %p840_p6 = por %p839_p8, %p838_p5 }
  0x8e   : > { %p842_p11 = por %p841_p7, %p840_p6 }
  0x90   : > { %p843_p13 = pnand %p842_p11, %p836_p3 }
  0x92   : > { %846 = shalt.err (!%p843_p13)  }
  0x93   : > { %s847_s6 = scalar_lea.vmem %s1252_s10, 96  ;;  %p852_p2 = scmp.lt.s32.totalorder %s1252_s10, %s1211_s14 }
  0x94   : > { %p848_p0 = scmp.ne.s32.totalorder %s1252_s10, %s847_s6  ;;  %p853_p4 = scmp.lt.s32.totalorder %s1242_s19, %s847_s6 }
  0x96   : > { %p854_p9 = por %p853_p4, %p852_p2 }
  0x98   : > { %p855_p10 = pnand %p854_p9, %p848_p0 }
  0x9a   : > { %858 = shalt.err (!%p855_p10)  }
  0x9b   : > { %191 = dma.hbm_to_vmem [thread:$0]  %s184_s20, 96, %s1252_s10, [#allocation3], %s1070_s24, %s1070_s24, %s1071_s26 }
  0x9c   : > { %s207_s17 = sadd.s32 4, %s1203_s13  ;;  %s517_s9 = scalar_lea.vmem %s1493_s16, 4 }
  0x9d   : > { %s1295_s21 = sld [smem:[#allocation5 + %s207_s17]]  ;;  %s194_s18 = sshrl.u32 %s1273_s22, 3 }
  0x9e   : > { %s195_s2 = sand.u32 7, %s1273_s22   ;;  %s196_s29 = smul.u32 48, %s194_s18 }
  0x9f   : > { %s218_s3 = sshll.u32 %s517_s9, 4  ;;  %s222_s27 = sadd.s32 5, %s1203_s13  ;;  %s1300_s3 = int_to_ptr.vmem [resolvable:$true] %s218_s3 }
  0xa0   : > { %s197_s30 = sadd.s32 %s196_s29, %s195_s2  ;;  %s1303_s15 = sld [smem:[#allocation5 + %s222_s27]] }
  0xa1   : > { %s649_s10 = sshll.u32 %s197_s30, 4  ;;  %s1306_s12 = scalar_lea.vmem %s1493_s16, 5 }
  0xa2   : > { %s199_s5 = scalar_lea.hbm %s1451_s1, %s649_s10 }
  0xa3   : > { %s209_s8 = sshrl.u32 %s1295_s21, 3  ;;  %s859_s6 = scalar_lea.hbm %s199_s5, 96 }
  0xa4   : > { %p860_p12 = scmp.ne.s32.totalorder %s199_s5, %s859_s6  ;;  %p862_p1 = scmp.lt.u32.totalorder %s199_s5, %s1451_s1 }
  0xa5   : > { %p863_p3 = scmp.lt.u32.totalorder %s1233_s7, %s859_s6  ;;  %p865_p8 = scmp.lt.u32.totalorder %s859_s6, %s199_s5 }
  0xa7   : > { %p864_p5 = por %p863_p3, %p862_p1 }
  0xa9   : > { %p866_p6 = por %p865_p8, %p864_p5 }
  0xab   : > { %p867_p7 = pnand %p866_p6, %p860_p12 }
  0xad   : > { %870 = shalt.err (!%p867_p7)  }
  0xae   : > { %s871_s9 = scalar_lea.vmem %s1292_s0, 96  ;;  %p876_p13 = scmp.lt.s32.totalorder %s1292_s0, %s1211_s14 }
  0xaf   : > { %p872_p11 = scmp.ne.s32.totalorder %s1292_s0, %s871_s9  ;;  %p877_p0 = scmp.lt.s32.totalorder %s1242_s19, %s871_s9 }
  0xb1   : > { %p878_p2 = por %p877_p0, %p876_p13 }
  0xb3   : > { %p879_p4 = pnand %p878_p2, %p872_p11 }
  0xb5   : > { %882 = shalt.err (!%p879_p4)  }
  0xb6   : > { %206 = dma.hbm_to_vmem [thread:$0]  %s199_s5, 96, %s1292_s0, [#allocation3], %s1070_s24, %s1070_s24, %s1071_s26 }
  0xb7   : > { %s210_s18 = sand.u32 7, %s1295_s21   ;;  %s211_s2 = smul.u32 48, %s209_s8 }
  0xb8   : > { %s233_s29 = sshll.u32 %s1306_s12, 4  ;;  %s237_s27 = sadd.s32 6, %s1203_s13  ;;  %s234_s29 = int_to_ptr.vmem [resolvable:$true] %s233_s29 }
  0xb9   : > { %s212_s30 = sadd.s32 %s211_s2, %s210_s18  ;;  %s224_s10 = sshrl.u32 %s1303_s15, 3 }
  0xba   : > { %s650_s20 = sshll.u32 %s212_s30, 4  ;;  %s225_s28 = sand.u32 7, %s1303_s15  }
  0xbb   : > { %s214_s17 = scalar_lea.hbm %s1451_s1, %s650_s20  ;;  %s226_s9 = smul.u32 48, %s224_s10 }
  0xbc   : > { %s883_s4 = scalar_lea.hbm %s214_s17, 96  ;;  %p886_p10 = scmp.lt.u32.totalorder %s214_s17, %s1451_s1 }
  0xbd   : > { %p884_p9 = scmp.ne.s32.totalorder %s214_s17, %s883_s4  ;;  %p887_p12 = scmp.lt.u32.totalorder %s1233_s7, %s883_s4 }
  0xbe   : > { %p889_p3 = scmp.lt.u32.totalorder %s883_s4, %s214_s17 }
  0xbf   : > { %p888_p1 = por %p887_p12, %p886_p10 }
  0xc1   : > { %p890_p5 = por %p889_p3, %p888_p1 }
  0xc3   : > { %p891_p8 = pnand %p890_p5, %p884_p9 }
  0xc5   : > { %894 = shalt.err (!%p891_p8)  }
  0xc6   : > { %s895_s0 = scalar_lea.vmem %s1300_s3, 96  ;;  %p900_p7 = scmp.lt.s32.totalorder %s1300_s3, %s1211_s14 }
  0xc7   : > { %p896_p6 = scmp.ne.s32.totalorder %s1300_s3, %s895_s0  ;;  %p901_p11 = scmp.lt.s32.totalorder %s1242_s19, %s895_s0 }
  0xc9   : > { %p902_p13 = por %p901_p11, %p900_p7 }
  0xcb   : > { %p903_p0 = pnand %p902_p13, %p896_p6 }
  0xcd   : > { %906 = shalt.err (!%p903_p0)  }
  0xce   : > { %221 = dma.hbm_to_vmem [thread:$0]  %s214_s17, 96, %s1300_s3, [#allocation3], %s1070_s24, %s1070_s24, %s1071_s26 }
  0xcf   : > { %s227_s23 = sadd.s32 %s226_s9, %s225_s28  ;;  %s1346_s4 = sld [smem:[#allocation5 + %s237_s27]] }
  0xd0   : > { %s651_s25 = sshll.u32 %s227_s23, 4  ;;  %s531_s5 = scalar_lea.vmem %s1493_s16, 6 }
  0xd1   : > { %s229_s12 = scalar_lea.hbm %s1451_s1, %s651_s25 }
  0xd2   : > { %s907_s8 = scalar_lea.hbm %s229_s12, 96  ;;  %p910_p4 = scmp.lt.u32.totalorder %s229_s12, %s1451_s1 }
  0xd3   : > { %p908_p2 = scmp.ne.s32.totalorder %s229_s12, %s907_s8  ;;  %p911_p9 = scmp.lt.u32.totalorder %s1233_s7, %s907_s8 }
  0xd4   : > { %p913_p12 = scmp.lt.u32.totalorder %s907_s8, %s229_s12 }
  0xd5   : > { %p912_p10 = por %p911_p9, %p910_p4 }
  0xd7   : > { %p914_p1 = por %p913_p12, %p912_p10 }
  0xd9   : > { %p915_p3 = pnand %p914_p1, %p908_p2 }
  0xdb   : > { %918 = shalt.err (!%p915_p3)  }
  0xdc   : > { %s919_s3 = scalar_lea.vmem %s234_s29, 96  ;;  %p924_p8 = scmp.lt.s32.totalorder %s234_s29, %s1211_s14 }
  0xdd   : > { %p920_p5 = scmp.ne.s32.totalorder %s234_s29, %s919_s3  ;;  %p925_p6 = scmp.lt.s32.totalorder %s1242_s19, %s919_s3 }
  0xdf   : > { %p926_p7 = por %p925_p6, %p924_p8 }
  0xe1   : > { %p927_p11 = pnand %p926_p7, %p920_p5 }
  0xe3   : > { %930 = shalt.err (!%p927_p11)  }
  0xe4   : > { %236 = dma.hbm_to_vmem [thread:$0]  %s229_s12, 96, %s234_s29, [#allocation3], %s1070_s24, %s1070_s24, %s1071_s26 }
  0xe5   : > { %s252_s27 = sadd.s32 7, %s1203_s13  ;;  %s248_s10 = sshll.u32 %s531_s5, 4  ;;  %s249_s10 = int_to_ptr.vmem [resolvable:$true] %s248_s10 }
  0xe6   : > { %s1362_s30 = sld [smem:[#allocation5 + %s252_s27]]  ;;  %s1365_s20 = scalar_lea.vmem %s1493_s16, 7 }
  0xe7   : > { %s239_s28 = sshrl.u32 %s1346_s4, 3  ;;  %s240_s6 = sand.u32 7, %s1346_s4  }
  0xe8   : > { %s241_s22 = smul.u32 48, %s239_s28  ;;  %s263_s9 = sshll.u32 %s1365_s20, 4  ;;  %s264_s9 = int_to_ptr.vmem [resolvable:$true] %s263_s9 }
  0xea   : > { %s242_s17 = sadd.s32 %s241_s22, %s240_s6 }
  0xeb   : > { %s652_s0 = sshll.u32 %s242_s17, 4 }
  0xec   : > { %s254_s23 = sshrl.u32 %s1362_s30, 3  ;;  %s244_s25 = scalar_lea.hbm %s1451_s1, %s652_s0 }
  0xed   : > { %s255_s21 = sand.u32 7, %s1362_s30   ;;  %s931_s15 = scalar_lea.hbm %s244_s25, 96 }
  0xee   : > { %p932_p13 = scmp.ne.s32.totalorder %s244_s25, %s931_s15  ;;  %p934_p0 = scmp.lt.u32.totalorder %s244_s25, %s1451_s1 }
  0xef   : > { %p935_p2 = scmp.lt.u32.totalorder %s1233_s7, %s931_s15  ;;  %p937_p9 = scmp.lt.u32.totalorder %s931_s15, %s244_s25 }
  0xf1   : > { %p936_p4 = por %p935_p2, %p934_p0 }
  0xf3   : > { %p938_p10 = por %p937_p9, %p936_p4 }
  0xf5   : > { %p939_p12 = pnand %p938_p10, %p932_p13 }
  0xf7   : > { %942 = shalt.err (!%p939_p12)  }
  0xf8   : > { %s943_s16 = scalar_lea.vmem %s249_s10, 96  ;;  %p948_p3 = scmp.lt.s32.totalorder %s249_s10, %s1211_s14 }
  0xf9   : > { %p944_p1 = scmp.ne.s32.totalorder %s249_s10, %s943_s16  ;;  %p949_p5 = scmp.lt.s32.totalorder %s1242_s19, %s943_s16 }
  0xfb   : > { %p950_p8 = por %p949_p5, %p948_p3 }
  0xfd   : > { %p951_p6 = pnand %p950_p8, %p944_p1 }
  0xff   : > { %954 = shalt.err (!%p951_p6)  }
 0x100   : > { %251 = dma.hbm_to_vmem [thread:$0]  %s244_s25, 96, %s249_s10, [#allocation3], %s1070_s24, %s1070_s24, %s1071_s26 }
 0x101   : > { %s256_s4 = smul.u32 48, %s254_s23 }
 0x103   : > { %s257_s8 = sadd.s32 %s256_s4, %s255_s21 }
 0x104   : > { %s653_s18 = sshll.u32 %s257_s8, 4 }
 0x105   : > { %s259_s27 = scalar_lea.hbm %s1451_s1, %s653_s18 }
 0x106   : > { %s955_s30 = scalar_lea.hbm %s259_s27, 96  ;;  %p958_p11 = scmp.lt.u32.totalorder %s259_s27, %s1451_s1 }
 0x107   : > { %p956_p7 = scmp.ne.s32.totalorder %s259_s27, %s955_s30  ;;  %p959_p13 = scmp.lt.u32.totalorder %s1233_s7, %s955_s30 }
 0x108   : > { %p961_p2 = scmp.lt.u32.totalorder %s955_s30, %s259_s27 }
 0x109   : > { %p960_p0 = por %p959_p13, %p958_p11 }
 0x10b   : > { %p962_p4 = por %p961_p2, %p960_p0 }
 0x10d   : > { %p963_p9 = pnand %p962_p4, %p956_p7 }
 0x10f   : > { %966 = shalt.err (!%p963_p9)  }
 0x110   : > { %s967_s10 = scalar_lea.vmem %s264_s9, 96  ;;  %p972_p12 = scmp.lt.s32.totalorder %s264_s9, %s1211_s14 }
 0x111   : > { %p968_p10 = scmp.ne.s32.totalorder %s264_s9, %s967_s10  ;;  %p973_p1 = scmp.lt.s32.totalorder %s1242_s19, %s967_s10 }
 0x113   : > { %p974_p3 = por %p973_p1, %p972_p12 }
 0x115   : > { %p975_p5 = pnand %p974_p3, %p968_p10 }
 0x117   : > { %978 = shalt.err (!%p975_p5)  }
 0x118   : > { %266 = dma.hbm_to_vmem [thread:$0]  %s259_s27, 96, %s264_s9, [#allocation3], %s1070_s24, %s1070_s24, %s1071_s26 }
 0x119   : > { %s127_s7 = scalar_lea.vmem [#allocation9], %s1207_s11 }
 0x11a   : > { %1037 = dma.done.wait [#allocation3], 768 }
 0x11b   : > { %1038 = vsyncadd [#allocation3], 4294966528  ;;  %s1494_s6 = sld [smem:[#allocation33_spill]]  ;;  %v403_v0 = vld [vmem:[#allocation6] sm:$0xff]  ;;  %v404_v2 = vld [vmem:[#allocation6 + $0x8] sm:$0xff]  ;;  %s443_s14 = sshll.u32 %s127_s7, 4  ;;  %s1403_s14 = int_to_ptr.vmem [resolvable:$true] %s443_s14 }
 0x11c   : > { %v409_v1 = vld [vmem:[#allocation2] sm:$0xff]  ;;  %v410_v4 = vld [vmem:[#allocation2 + $0x8] sm:$0xff]  ;;  %v405_v5 = vld [vmem:[#allocation6 + $0x10] sm:$0xff]  ;;  %s1495_s19 = sld [smem:[#allocation31_spill]]  ;;  %s1497_s17 = sld [smem:[#allocation41_spill]] }
 0x11d   : > { %v415_v3 = vadd.f32 %v409_v1, %v403_v0  ;;  %v411_v6 = vld [vmem:[#allocation2 + $0x10] sm:$0xff]  ;;  %v416_v7 = vadd.f32 %v410_v4, %v404_v2  ;;  %v406_v9 = vld [vmem:[#allocation6 + $0x18] sm:$0xff]  ;;  %v407_v11 = vld [vmem:[#allocation6 + $0x20] sm:$0xff]  ;;  %s1496_s11 = sld [smem:[#allocation37_spill]]  ;;  %s979_s29 = scalar_lea.vmem %s1403_s14, 768 }
 0x11e   : > { %v417_v8 = vadd.f32 %v411_v6, %v405_v5  ;;  %v412_v10 = vld [vmem:[#allocation2 + $0x18] sm:$0xff]  ;;  %v413_v13 = vld [vmem:[#allocation2 + $0x20] sm:$0xff]  ;;  %v408_v14 = vld [vmem:[#allocation6 + $0x28] sm:$0xff]  ;;  %p980_p8 = scmp.ne.s32.totalorder %s1403_s14, %s979_s29  ;;  %s1072_s13 = smov [#allocation9]  }
 0x11f   : > { %421 = vst [vmem:[%s127_s7] sm:$0xff] %v415_v3  ;;  %v418_v12 = vadd.f32 %v412_v10, %v406_v9  ;;  %v414_v15 = vld [vmem:[#allocation2 + $0x28] sm:$0xff]  ;;  %422 = vst [vmem:[%s127_s7 + $0x8] sm:$0xff] %v416_v7  ;;  %v419_v16 = vadd.f32 %v413_v13, %v407_v11  ;;  %s983_s25 = sshll.u32 %s1072_s13, 4  ;;  %s984_s25 = int_to_ptr.vmem [resolvable:$false] %s983_s25 }
 0x120   : > { %423 = vst [vmem:[%s127_s7 + $0x10] sm:$0xff] %v417_v8  ;;  %v420_v17 = vadd.f32 %v414_v15, %v408_v14  ;;  %s985_s21 = scalar_lea.vmem %s984_s25, 1536  ;;  %p986_p13 = scmp.lt.s32.totalorder %s1403_s14, %s984_s25 }
 0x121   : > { %s678_s22 = smul.u32 768, %s1494_s6  ;;  %424 = vst [vmem:[%s127_s7 + $0x18] sm:$0xff] %v418_v12  ;;  %425 = vst [vmem:[%s127_s7 + $0x20] sm:$0xff] %v419_v16  ;;  %p987_p0 = scmp.lt.s32.totalorder %s985_s21, %s979_s29 }
 0x122   : > { %426 = vst [vmem:[%s127_s7 + $0x28] sm:$0xff] %v420_v17  ;;  %s1498_s0 = sand.u32 1, %s1495_s19  }
 0x123   : > { %s1401_s9 = scalar_lea.hbm %s1497_s17, %s678_s22  ;;  %s428_s23 = scalar_lea.sflag [#allocation8], %s1498_s0 }
 0x124   : > { %p1499_p6 = scmp.ne.s32.totalorder %s1496_s11, 0  ;;  %p988_p2 = por %p987_p0, %p986_p13 }
 0x126   : > { %p981_p7 = pnand %p980_p8, %p1499_p6 }
 0x128   : > { %p982_p11 = pneg %p981_p7 }
 0x12a   : > { %p989_p4 = pnand %p988_p2, %p982_p11 }
 0x12c   : > { %992 = shalt.err (!%p989_p4)
}
 0x12d   : > { %s993_s15 = scalar_lea.hbm %s1401_s9, 768  ;;  %s997_s16 = scalar_lea.hbm %s1497_s17, 1536 }
 0x12e   : > { %p994_p9 = scmp.ne.s32.totalorder %s1401_s9, %s993_s15  ;;  %p998_p1 = scmp.lt.u32.totalorder %s1401_s9, %s1497_s17 }
 0x12f   : > { %p999_p3 = scmp.lt.u32.totalorder %s997_s16, %s993_s15  ;;  %p1001_p8 = scmp.lt.u32.totalorder %s993_s15, %s1401_s9 }
 0x130   : > { %p995_p10 = pnand %p994_p9, %p1499_p6 }
 0x131   : > { %p1000_p5 = por %p999_p3, %p998_p1 }
 0x132   : > { %p996_p12 = pneg %p995_p10 }
 0x133   : > { %p1002_p7 = por %p1001_p8, %p1000_p5 }
 0x135   : > { %p1003_p11 = pnand %p1002_p7, %p996_p12 }
 0x137   : > { %1006 = shalt.err (!%p1003_p11)
}
 0x138   : > { %683 = dma.vmem_to_hbm [thread:$0]  (%p1499_p6), %s1403_s14, 768, %s1401_s9, %s428_s23  }
 0x139 PF: > { %s1500_s18 = sld [smem:[#allocation35_spill]]  ;;  %s1501_s2 = sld [smem:[#allocation30_spill]] }
 0x13a   : > { %s1502_s3 = sld [smem:[#allocation38_spill]] }
 0x13f   : > { %p695_p13 = scmp.ge.s32.totalorder %s1500_s18, 2  ;;  %s455_s27 = sand.u32 1, %s1501_s2  }
 0x140   : > { %p1503_p0 = scmp.ne.s32.totalorder %s1502_s3, 0  ;;  %s456_s30 = scalar_lea.sflag [#allocation8], %s455_s27 }
 0x142   : > { %p690_p2 = pnand %p695_p13, %p1503_p0 }
 0x144   : > { %1040 = dma.done.wait (!%p690_p2), %s456_s30, 768  }
 0x145   : > { %1042 = vsyncadd (!%p690_p2), %s456_s30, 4294966528  ;;  %s21_s27 = sadd.s32 1, %s1500_s18   ;;  %s1504_s22 = sld [smem:[#allocation31_spill]] }
 0x146   : > { %p18_p4 = scmp.ge.s32.totalorder %s21_s27, 4   ;;  %s1505_s23 = sld [smem:[#allocation32_spill]] }
 0x147   : > { %s1506_s24 = sld [smem:[#allocation39_spill]]  ;;  %s1507_s25 = sld [smem:[#allocation34_spill]] }
 0x148   : > { %s1508_s26 = sld [smem:[#allocation36_spill]]  ;;  %20 = sbr.rel (!%p18_p4) target bundleno = 18 (0x12), region = 106 }
 0x14f   :  { %461 = vsyncpa [#allocation7], 1 }
 0x150   :  { %463 = vsyncpa [#allocation7 + $0x1], 1 }
 0x151   :  { %464 = vsyncpa [#allocation8], 1 }
 0x152   :  { %466 = vsyncpa [#allocation8 + $0x1], 1 }
 0x153   :  { %467 = vsyncmov [#allocation3] }
 0x156   :  { %s468_s20 = vpop.sfrf %467 }
 0x157   :  { %p673_p6 = scmp.ne.s32.totalorder %s468_s20, 0 }
 0x159   :  { %472 = shalt.err (%p673_p6)  }
 0x15a   :  { %474 = vsyncmov [#allocation3 + $0x1] }
 0x15d   :  { %s475_s28 = vpop.sfrf %474 }
 0x15e   :  { %p674_p9 = scmp.ne.s32.totalorder %s475_s28, 0 }
 0x160   :  { %479 = shalt.err (%p674_p9)  }

</bundles_post_ra>
